<compile_context>
chip_gen: v6e
topology: v6e:2x2x1
jax: 0.10.0
libtpu: 0.0.40
codegen_flags: <defaults>
</compile_context>

<pallas_src>
import functools
import numpy as np
import jax
import jax.numpy as jnp
from jax.experimental import pallas as pl
from jax.experimental.pallas import tpu as pltpu

# ------------------------- filter pattern setup (glue) -------------------------

FILTER_PATTERNS = {
    'smooth':               [1.0, -0.5, 0.1, -0.02, 0.004, -0.0008, 0.00015, -3e-05],
    'butterworth':          [1.0, -0.6, 0.2, -0.05, 0.01, -0.002, 0.0003, -5e-05],
    'gaussian':             [1.0, -0.7, 0.15, -0.03, 0.005, -0.0007, 8e-05, -8e-06],
    'bessel':               [1.0, -0.3, 0.06, -0.008, 0.0008, -6e-05, 4e-06, -2e-07],
    'conservative':         [1.0, -0.2, 0.03, -0.002, 0.0001, -5e-06, 2e-07, -1e-08],
    'golden_036':           [1.0, -0.36, 0.1296, -0.22, 0.1564, -0.088, 0.0548, -0.0339],
    'soft_golden_ratio':    [1.0, -0.35, 0.1225, -0.214, 0.1519, -0.0855, 0.0532, -0.0329],
    'golden_ratio_balanced':[1.0, -0.35, 0.1225, -0.215, 0.152, -0.0857, 0.0533, -0.033],
    'golden_optimized_1':   [1.0, -0.35, 0.1225, -0.2142, 0.1519, -0.0856, 0.0533, -0.033],
    'fibonacci_soft':       [1.0, -0.35, 0.1225, -0.213, 0.1597, -0.0987, 0.061, -0.0377],
    'oscillatory_soft':     [1.0, -0.35, 0.1225, -0.21, 0.168, -0.084, 0.042, -0.021],
    'soft_tuned_351':       [1.0, -0.351, 0.123201, -0.2106, 0.16848, -0.08424, 0.04212, -0.02106],
    'soft_tuned_352':       [1.0, -0.352, 0.123904, -0.2112, 0.16896, -0.08448, 0.04224, -0.02112],
}

FILTER_NAMES = ['golden_036', 'soft_golden_ratio', 'golden_ratio_balanced',
                'golden_optimized_1', 'smooth', 'butterworth', 'gaussian', 'bessel',
                'conservative', 'fibonacci_soft', 'oscillatory_soft',
                'soft_tuned_351', 'soft_tuned_352']

FILTER_ORDER = 6          # -> filter_order + 1 = 7 coefficients
INIT_FILTER_NAME = 'smooth'


def get_filter_coefficients(name, order):
    coeffs = list(FILTER_PATTERNS[name])
    if len(coeffs) > order + 1:
        coeffs = coeffs[:order + 1]
    elif len(coeffs) < order + 1:
        coeffs = coeffs + [0.0] * (order + 1 - len(coeffs))
    return coeffs


def init_params(filter_order=FILTER_ORDER, init_filter_name=INIT_FILTER_NAME):
    """Deterministic parameter init matching the PyTorch module __init__."""
    bank = np.stack([np.asarray(get_filter_coefficients(n, filter_order), np.float32)
                     for n in FILTER_NAMES], axis=0)          # (13, order+1)

    init_weights = np.ones(len(FILTER_NAMES), np.float32) * 0.02
    golden = {'golden_036', 'soft_golden_ratio', 'golden_ratio_balanced', 'golden_optimized_1'}
    for i, name in enumerate(FILTER_NAMES):
        if name == init_filter_name:
            init_weights[i] = 0.4
        elif name in golden:
            init_weights[i] = 0.15
        elif name in ('smooth', 'butterworth'):
            init_weights[i] = 0.08
    init_weights = init_weights / init_weights.sum()

    params = {
        'mixing_weights':    jnp.asarray(init_weights),                          # (13,)
        'refinement_coeffs': jnp.zeros((filter_order + 1,), jnp.float32),        # (7,)
        'refinement_scale':  jnp.float32(0.2),
        'transform_scale':   jnp.float32(1.0),
        'transform_bias':    jnp.float32(0.0),
    }
    return params, jnp.asarray(bank)


# ------------------------------- Pallas kernels ---------------------------------

def _clenshaw(x, p_ref, order):
    """sum_k c_k T_k(x) via Clenshaw; c_k read as scalars from SMEM p_ref.
    transform_scale is folded into the coefficients and transform_bias into c0
    by the wrapper, so no epilogue multiply/add is needed."""
    if order == 0:
        return p_ref[0] + jnp.zeros_like(x)
    if order == 1:
        return p_ref[0] + p_ref[1] * x
    twox = x + x                                          # hoisted 2x
    b1 = p_ref[order - 1] + twox * p_ref[order]           # b_{order-1}
    if order == 2:
        return (p_ref[0] - p_ref[2]) + x * b1
    b2 = b1
    b1 = (p_ref[order - 2] - p_ref[order]) + twox * b1    # b_{order-2}
    for k in range(order - 3, 0, -1):                     # static unroll
        b1, b2 = p_ref[k] + twox * b1 - b2, b1
    return p_ref[0] + x * b1 - b2


def _epilogue(result):
    # exp goes to the EUP slot (effectively free next to the VPU work above)
    return jnp.exp(-jnp.minimum(jnp.abs(result), 10.0)) + 1e-6


def spectral_filter_tiled_kernel(p_ref, eig_ref, out_ref, *, order):
    """p_ref: SMEM (order+2,) = [c0*s + bias, c1*s, ..., c_order*s, inv_scale]
       eig_ref / out_ref: VMEM (block_rows, 1024) float32 tiles."""
    inv_scale = p_ref[order + 1]                 # 2 / (max_eig + 1e-8), prefolded
    x = eig_ref[...] * inv_scale - 1.0           # normalize to [-1, 1]
    out_ref[...] = _epilogue(_clenshaw(x, p_ref, order))


def spectral_filter_fused_kernel(p_ref, eig_ref, out_ref, *, order):
    """Fused max + filter for VMEM-resident spectra: one HBM read, one write.
       p_ref: SMEM (order+1,) coefficients only; max computed in-kernel."""
    ev = eig_ref[...]
    inv_scale = 2.0 / (jnp.max(ev) + 1e-8)       # XLU reduce; no extra HBM pass
    x = ev * inv_scale - 1.0
    out_ref[...] = _epilogue(_clenshaw(x, p_ref, order))


# --------------------------------- wrapper --------------------------------------

LANE = 1024                         # lane-dense last dim -> wide unmasked vst
MAX_BLOCK_ROWS = 512                # (512, 1024) f32 = 2 MiB per block per buffer
FUSED_MAX_ELEMS = MAX_BLOCK_ROWS * LANE   # <= 2 MiB input -> whole array VMEM-resident
VMEM_LIMIT_BYTES = 40 * 1024 * 1024 # explicit: > v5e 16 MiB default, < v7x 64 MiB/TC


def _round_up(a, b):
    return (a + b - 1) // b * b


def enhanced_spectral_basis_filter(eigenvalues, params, filter_bank,
                                   filter_order=FILTER_ORDER,
                                   *, assume_sorted=False,
                                   fused_max_elems=FUSED_MAX_ELEMS,
                                   max_block_rows=MAX_BLOCK_ROWS):
    """Pallas implementation of EnhancedSpectralBasisFilter.forward.

    assume_sorted: eigenvalues ascending (typical eigh output) -> use ev[-1]
    instead of a full jnp.max HBM pass in the tiled path.
    """
    # ---- parameter mixing (tiny: 13x7) stays in plain JAX as parameter setup ----
    weights = jax.nn.softmax(params['mixing_weights'])
    mixed_coeffs = weights @ filter_bank                              # (order+1,)
    refinement = params['refinement_scale'] * jnp.tanh(params['refinement_coeffs'])
    final_coeffs = (mixed_coeffs + refinement).astype(jnp.float32)

    # Fold transform_scale into the coefficients and transform_bias into c0.
    scaled = params['transform_scale'].astype(jnp.float32) * final_coeffs
    c0 = scaled[0] + params['transform_bias'].astype(jnp.float32)
    coeffs = jnp.concatenate([c0[None], scaled[1:]]).astype(jnp.float32)  # (order+1,)

    ev = eigenvalues.astype(jnp.float32)
    n = ev.shape[0]
    order = filter_order

    # ------------------ fused path: max + filter in one kernel -------------------
    if n <= fused_max_elems:
        rows = pl.cdiv(n, LANE)
        padded_n = rows * LANE
        if padded_n != n:
            # edge padding: duplicates of existing values keep the in-kernel max
            # correct and produce finite (discarded) outputs; cheap at this size.
            ev = jnp.pad(ev, (0, padded_n - n), mode='edge')
        ev2 = ev.reshape(rows, LANE)                     # metadata-only reshape

        out = pl.pallas_call(
            functools.partial(spectral_filter_fused_kernel, order=order),
            out_shape=jax.ShapeDtypeStruct((rows, LANE), jnp.float32),
            grid_spec=pltpu.PrefetchScalarGridSpec(
                num_scalar_prefetch=1,                   # coeffs -> SMEM
                grid=(1,),
                in_specs=[pl.BlockSpec((rows, LANE), lambda i, _p: (0, 0))],
                out_specs=pl.BlockSpec((rows, LANE), lambda i, _p: (0, 0)),
            ),
            compiler_params=pltpu.CompilerParams(
                dimension_semantics=("arbitrary",),
                vmem_limit_bytes=VMEM_LIMIT_BYTES),
            cost_estimate=pl.CostEstimate(flops=24 * padded_n,
                                          transcendentals=padded_n,
                                          bytes_accessed=8 * padded_n),
        )(coeffs, ev2)
        flat = out.reshape(-1)
        return flat[:n] if padded_n != n else flat

    # ------------------------------ tiled path -----------------------------------
    max_e = ev[-1] if assume_sorted else jnp.max(ev)     # skip extra HBM pass if sorted
    inv_scale = 2.0 / (max_e + 1e-8)
    p = jnp.concatenate([coeffs, inv_scale[None]]).astype(jnp.float32)

    rows = pl.cdiv(n, LANE)
    padded_n = rows * LANE
    # TODO(synk): large ragged N still pays one pad + one tail-slice pass; a
    # masked 1-D edge-block path would remove them but 1-D VMEM layouts are
    # sublane-sparse on TPU, so the 2-D pad is the lesser evil here.
    if padded_n != n:
        ev = jnp.pad(ev, (0, padded_n - n))
    ev2 = ev.reshape(rows, LANE)

    # Balance block rows across the grid: large N always gets >= 2 blocks
    # (v7x 2-TensorCore split); the last block may be partial (Pallas masks it).
    num_blocks = pl.cdiv(rows, max_block_rows)
    block_rows = min(_round_up(pl.cdiv(rows, num_blocks), 8), rows)
    grid = pl.cdiv(rows, block_rows)

    out = pl.pallas_call(
        functools.partial(spectral_filter_tiled_kernel, order=order),
        out_shape=jax.ShapeDtypeStruct((rows, LANE), jnp.float32),
        grid_spec=pltpu.PrefetchScalarGridSpec(
            num_scalar_prefetch=1,                       # p -> SMEM
            grid=(grid,),
            in_specs=[pl.BlockSpec((block_rows, LANE), lambda i, _p: (i, 0))],
            out_specs=pl.BlockSpec((block_rows, LANE), lambda i, _p: (i, 0)),
        ),
        # TODO(synk): if v7x profiling shows a single-TC run, switch to
        # dimension_semantics=(pltpu.CORE_PARALLEL,) / pl.core_map for the split.
        compiler_params=pltpu.CompilerParams(
            dimension_semantics=("parallel",),
            vmem_limit_bytes=VMEM_LIMIT_BYTES),
        cost_estimate=pl.CostEstimate(flops=23 * padded_n,
                                      transcendentals=padded_n,
                                      bytes_accessed=8 * padded_n),
    )(p, ev2)
    flat = out.reshape(-1)
    return flat[:n] if padded_n != n else flat


# ----------------------------- pure-JAX reference --------------------------------

def reference_forward(eigenvalues, params, filter_bank):
    weights = jax.nn.softmax(params['mixing_weights'])
    final_coeffs = weights @ filter_bank + params['refinement_scale'] * jnp.tanh(
        params['refinement_coeffs'])
    ev = eigenvalues.astype(jnp.float32)
    max_e = jnp.max(ev) + 1e-8
    x = 2.0 * (ev / max_e) - 1.0
    result = final_coeffs[0] * jnp.ones_like(x)
    t_prev, t_curr = jnp.ones_like(x), x
    result = result + final_coeffs[1] * t_curr
    for i in range(2, final_coeffs.shape[0]):
        t_next = 2.0 * x * t_curr - t_prev
        result = result + final_coeffs[i] * t_next
        t_prev, t_curr = t_curr, t_next
    result = params['transform_scale'] * result + params['transform_bias']
    return jnp.exp(-jnp.minimum(jnp.abs(result), 10.0)) + 1e-6


# ------------------------------------ main ---------------------------------------

if __name__ == "__main__":
    params, filter_bank = init_params()
    key = jax.random.PRNGKey(0)

    # Small deterministic spectra covering every code path:
    #   1) lane-aligned, fused (no pad)
    #   2) ragged, fused (edge-pad, in-kernel max)
    #   3) forced tiled, single partial block (block == full dims)
    #   4) forced tiled, multi-block grid with masked partial edge block + jnp.max
    tests = [
        dict(n=1024,  kwargs={}),
        dict(n=6000,  kwargs={}),
        dict(n=6000,  kwargs=dict(fused_max_elems=0, max_block_rows=8)),
        dict(n=40000, kwargs=dict(fused_max_elems=0, max_block_rows=16)),
    ]
    for t in tests:
        key, sub = jax.random.split(key)
        eigenvalues = jax.random.uniform(sub, (t['n'],), dtype=jnp.float32,
                                         minval=0.0, maxval=2.0)
        out = enhanced_spectral_basis_filter(eigenvalues, params, filter_bank,
                                             **t['kwargs'])
        out = jax.block_until_ready(out)
        ref = reference_forward(eigenvalues, params, filter_bank)
        np.testing.assert_allclose(np.asarray(out), np.asarray(ref),
                                   rtol=3e-5, atol=3e-6)

    # Sorted-input fast path (skips the jnp.max HBM pass in the tiled branch).
    key, sub = jax.random.split(key)
    ev_sorted = jnp.sort(jax.random.uniform(sub, (4096,), dtype=jnp.float32,
                                            minval=0.0, maxval=2.0))
    out = jax.block_until_ready(
        enhanced_spectral_basis_filter(ev_sorted, params, filter_bank,
                                       assume_sorted=True, fused_max_elems=0))
    ref = reference_forward(ev_sorted, params, filter_bank)
    np.testing.assert_allclose(np.asarray(out), np.asarray(ref),
                               rtol=3e-5, atol=3e-6)

    print("KERNEL_OK")
</pallas_src>

<mosaic_0001>
module attributes {stable_mosaic.version = 11 : i64} {
  func.func @spectral_filter_fused_kernel(%arg0: i32, %arg1: memref<7xf32, #tpu.memory_space<smem>>, %arg2: memref<1x1024xf32, #tpu.memory_space<vmem>>, %arg3: memref<1x1024xf32, #tpu.memory_space<vmem>>) attributes {dimension_semantics = [#tpu.dimension_semantics<arbitrary>], iteration_bounds = array<i64: 1>, scalar_prefetch = 1 : i64, scratch_operands = 0 : i64, tpu.core_type = #tpu.core_type<tc>, window_params = [{pipeline_mode = #tpu.pipeline_mode<synchronous>, transform_indices = @transform_0, window_bounds = array<i64: 1, 1024>}, {pipeline_mode = #tpu.pipeline_mode<synchronous>, transform_indices = @transform_1, window_bounds = array<i64: 1, 1024>}]} {
    %c0 = arith.constant 0 : index
    %c0_0 = arith.constant 0 : index
    %0 = vector.load %arg2[%c0, %c0_0] : memref<1x1024xf32, #tpu.memory_space<vmem>>, vector<1x1024xf32>
    %1 = vector.shape_cast %0 : vector<1x1024xf32> to vector<1x1x1024xf32>
    %cst = arith.constant dense<0xFF800000> : vector<1xf32>
    %2 = vector.multi_reduction <maximumf>, %1, %cst [1, 2] : vector<1x1x1024xf32> to vector<1xf32>
    %3 = vector.shape_cast %2 : vector<1xf32> to vector<1x1x1xf32>
    %4 = vector.extract %3[0, 0, 0] : f32 from vector<1x1x1xf32>
    %cst_1 = arith.constant 9.99999993E-9 : f32
    %5 = arith.addf %4, %cst_1 : f32
    %cst_2 = arith.constant 2.000000e+00 : f32
    %6 = arith.divf %cst_2, %5 : f32
    %7 = vector.broadcast %6 : f32 to vector<1x1024xf32>
    %8 = arith.mulf %0, %7 : vector<1x1024xf32>
    %cst_3 = arith.constant 1.000000e+00 : f32
    %9 = vector.broadcast %cst_3 : f32 to vector<1x1024xf32>
    %10 = arith.subf %8, %9 : vector<1x1024xf32>
    %11 = arith.addf %10, %10 : vector<1x1024xf32>
    %c5 = arith.constant 5 : index
    %12 = memref.load %arg1[%c5] : memref<7xf32, #tpu.memory_space<smem>>
    %c6 = arith.constant 6 : index
    %13 = memref.load %arg1[%c6] : memref<7xf32, #tpu.memory_space<smem>>
    %14 = vector.broadcast %13 : f32 to vector<1x1024xf32>
    %15 = arith.mulf %11, %14 : vector<1x1024xf32>
    %16 = vector.broadcast %12 : f32 to vector<1x1024xf32>
    %17 = arith.addf %16, %15 : vector<1x1024xf32>
    %c4 = arith.constant 4 : index
    %18 = memref.load %arg1[%c4] : memref<7xf32, #tpu.memory_space<smem>>
    %c6_4 = arith.constant 6 : index
    %19 = memref.load %arg1[%c6_4] : memref<7xf32, #tpu.memory_space<smem>>
    %20 = arith.subf %18, %19 : f32
    %21 = arith.mulf %11, %17 : vector<1x1024xf32>
    %22 = vector.broadcast %20 : f32 to vector<1x1024xf32>
    %23 = arith.addf %22, %21 : vector<1x1024xf32>
    %c3 = arith.constant 3 : index
    %24 = memref.load %arg1[%c3] : memref<7xf32, #tpu.memory_space<smem>>
    %25 = arith.mulf %11, %23 : vector<1x1024xf32>
    %26 = vector.broadcast %24 : f32 to vector<1x1024xf32>
    %27 = arith.addf %26, %25 : vector<1x1024xf32>
    %28 = arith.subf %27, %17 : vector<1x1024xf32>
    %c2 = arith.constant 2 : index
    %29 = memref.load %arg1[%c2] : memref<7xf32, #tpu.memory_space<smem>>
    %30 = arith.mulf %11, %28 : vector<1x1024xf32>
    %31 = vector.broadcast %29 : f32 to vector<1x1024xf32>
    %32 = arith.addf %31, %30 : vector<1x1024xf32>
    %33 = arith.subf %32, %23 : vector<1x1024xf32>
    %c1 = arith.constant 1 : index
    %34 = memref.load %arg1[%c1] : memref<7xf32, #tpu.memory_space<smem>>
    %35 = arith.mulf %11, %33 : vector<1x1024xf32>
    %36 = vector.broadcast %34 : f32 to vector<1x1024xf32>
    %37 = arith.addf %36, %35 : vector<1x1024xf32>
    %38 = arith.subf %37, %28 : vector<1x1024xf32>
    %c0_5 = arith.constant 0 : index
    %39 = memref.load %arg1[%c0_5] : memref<7xf32, #tpu.memory_space<smem>>
    %40 = arith.mulf %10, %38 : vector<1x1024xf32>
    %41 = vector.broadcast %39 : f32 to vector<1x1024xf32>
    %42 = arith.addf %41, %40 : vector<1x1024xf32>
    %43 = arith.subf %42, %33 : vector<1x1024xf32>
    %44 = math.absf %43 : vector<1x1024xf32>
    %cst_6 = arith.constant 1.000000e+01 : f32
    %45 = vector.broadcast %cst_6 : f32 to vector<1x1024xf32>
    %46 = arith.minimumf %44, %45 : vector<1x1024xf32>
    %cst_7 = arith.constant 0.000000e+00 : f32
    %47 = vector.broadcast %cst_7 : f32 to vector<1x1024xf32>
    %48 = arith.subf %47, %46 : vector<1x1024xf32>
    %49 = math.exp %48 : vector<1x1024xf32>
    %cst_8 = arith.constant 9.99999997E-7 : f32
    %50 = vector.broadcast %cst_8 : f32 to vector<1x1024xf32>
    %51 = arith.addf %49, %50 : vector<1x1024xf32>
    %c0_9 = arith.constant 0 : index
    %c0_10 = arith.constant 0 : index
    %52 = vector.load %arg3[%c0_9, %c0_10] : memref<1x1024xf32, #tpu.memory_space<vmem>>, vector<1x1024xf32>
    tpu.vector_store %arg3[%c0_9, %c0_10], %51 {strides = array<i32>} : memref<1x1024xf32, #tpu.memory_space<vmem>>, vector<1x1024xf32>,
    return
  }
  func.func @transform_0(%arg0: i32, %arg1: memref<7xf32, #tpu.memory_space<smem>>) -> (i32, i32) {
    %c0_i32 = arith.constant 0 : i32
    %c0_i32_0 = arith.constant 0 : i32
    %c0_i32_1 = arith.constant 0 : i32
    return %c0_i32, %c0_i32_0 : i32, i32
  }
  func.func @transform_1(%arg0: i32, %arg1: memref<7xf32, #tpu.memory_space<smem>>) -> (i32, i32) {
    %c0_i32 = arith.constant 0 : i32
    %c0_i32_0 = arith.constant 0 : i32
    %c0_i32_1 = arith.constant 0 : i32
    return %c0_i32, %c0_i32_0 : i32, i32
  }
}

</mosaic_0001>

<bundles_post_ra>
// kernel: tpu_custom_call.1
= control target key start
LH: loop header
LB: loop body
LE: loop exit
PB: predicated region body
PF: predicated region fallthrough
CT: control target
= control target key end

     0   :  { %s227_s9 = smov [#allocation3]   ;;  %s262_s0 = inlined_call_operand.hbm [shape: f32[7], index: 0, kind: input, shape index: {}]   ;;  %s263_s1 = inlined_call_operand.hbm [shape: f32[1,1024], index: 1, kind: input, shape index: {}]   ;;  %s264_s2 = inlined_call_operand.hbm [shape: f32[1,1024], index: 2, kind: output, shape index: {}]  }
   0x1   :  { %8 = dma.hbm_to_smem %s262_s0, 16, %s227_s9, [#allocation2] }
   0x2   :  { %221 = dma.done.wait [#allocation2], 16 }
   0x3   :  { %222 = vsyncadd [#allocation2], 4294967280 }
   0x4   :  { %10 = sfence }
   0x5   :  { %11 = vsyncpa [#allocation5], 0 }
   0x6   :  { %12 = vsyncpa [#allocation6], 0  ;;  %s228_s12 = smov [#allocation4]  }
   0x7   :  { %s19_s13 = sshll.u32 %s228_s12, 4  ;;  %s20_s13 = int_to_ptr.vmem [resolvable:$true] %s19_s13 }
   0x8   :  { %s189_s14 = scalar_lea.vmem %s20_s13, 128  ;;  %p194_p1 = scmp.lt.s32.totalorder %s20_s13, %s20_s13 }
   0x9   :  { %p190_p0 = scmp.ne.s32.totalorder %s20_s13, %s189_s14  ;;  %p195_p2 = scmp.lt.s32.totalorder %s189_s14, %s189_s14 }
   0xb   :  { %p196_p3 = por %p195_p2, %p194_p1 }
   0xd   :  { %p197_p4 = pnand %p196_p3, %p190_p0 }
   0xf   :  { %200 = shalt.err (!%p197_p4)
}
  0x10   :  { %22 = dma.hbm_to_vmem [thread:$0]  %s263_s1, 128, %s20_s13, [#allocation5]  }
  0x11   :  { %223 = dma.done.wait [#allocation5], 128  }
  0x12   :  { %224 = vsyncadd [#allocation5], 4294967168  ;;  %v28_v0 = vlaneseq  ;;  %v26_v10 = vld [vmem:[#allocation4] sm:$0xff]  ;;  %vm68_vm0 = vcmask 1040384   ;;  %s157_s17 = sld [smem:[#allocation3 + $0x6]]  ;;  %s229_s27 = smov [#allocation7]  }
  0x13   :  { %s158_s19 = sld [smem:[#allocation3 + $0x4]]  ;;  %s146_s28 = sshll.u32 %s229_s27, 4  ;;  %s147_s28 = int_to_ptr.vmem [resolvable:$true] %s146_s28 }
  0x14   :  { %v29_v1 = vshrl.u32 %v28_v0, 7  ;;  %s156_s21 = sld [smem:[#allocation3 + $0x5]]  ;;  %s201_s29 = scalar_lea.vmem %s147_s28, 128 }
  0x15   :  { %s159_s23 = sld [smem:[#allocation3 + $0x3]]  ;;  %p202_p5 = scmp.ne.s32.totalorder %s147_s28, %s201_s29 }
  0x16   :  { %v30_v2 = vsub.s32 0, %v29_v1  ;;  %v34_v3 = vsub.s32 1, %v29_v1  ;;  %v38_v4 = vsub.s32 2, %v29_v1  ;;  %v42_v5 = vsub.s32 3, %v29_v1  ;;  %s160_s24 = sld [smem:[#allocation3 + $0x2]]  ;;  %p206_p6 = scmp.lt.s32.totalorder %s147_s28, %s147_s28 }
  0x17   :  { %v46_v6 = vsub.s32 4, %v29_v1  ;;  %v50_v7 = vsub.s32 5, %v29_v1  ;;  %v54_v8 = vsub.s32 6, %v29_v1  ;;  %v58_v9 = vsub.s32 7, %v29_v1  ;;  %s161_s25 = sld [smem:[#allocation3 + $0x1]]  ;;  %p207_p7 = scmp.lt.s32.totalorder %s201_s29, %s201_s29 }
  0x18   :  { %v31_v11 = vrot.slane %v26_v10, %v30_v2  ;;  %v35_v12 = vrot.slane %v26_v10, %v34_v3  ;;  %v39_v13 = vrot.slane %v26_v10, %v38_v4  ;;  %v43_v14 = vrot.slane %v26_v10, %v42_v5  ;;  %s128_s26 = sld [smem:[#allocation3]] }
  0x19   :  { %v47_v15 = vrot.slane %v26_v10, %v46_v6  ;;  %v51_v16 = vrot.slane %v26_v10, %v50_v7  ;;  %v55_v17 = vrot.slane %v26_v10, %v54_v8  ;;  %v59_v18 = vrot.slane %v26_v10, %v58_v9  ;;  %s109_s22 = ssub.f32 %s158_s19, %s157_s17  ;;  %p208_p8 = por %p207_p7, %p206_p6 }
  0x1a   :  { %v69_v19 = vsel %vm68_vm0, %v31_v11, -inf  ;;  %v70_v20 = vsel %vm68_vm0, %v35_v12, -inf  ;;  %v71_v21 = vsel %vm68_vm0, %v39_v13, -inf  ;;  %v72_v22 = vsel %vm68_vm0, %v43_v14, -inf }
  0x1b   :  { %v73_v23 = vsel %vm68_vm0, %v47_v15, -inf  ;;  %v75_v24 = vsel %vm68_vm0, %v51_v16, -inf  ;;  %v77_v25 = vsel %vm68_vm0, %v55_v17, -inf  ;;  %v79_v26 = vsel %vm68_vm0, %v59_v18, -inf  ;;  %p209_p9 = pnand %p208_p8, %p202_p5 }
  0x1c   :  { %v74_v27 = vmax.f32 %v69_v19, %v73_v23  ;;  %v76_v28 = vmax.f32 %v70_v20, %v75_v24  ;;  %v78_v29 = vmax.f32 %v71_v21, %v77_v25  ;;  %v80_v30 = vmax.f32 %v72_v22, %v79_v26 }
  0x1d   :  { %v104_v46 = vstv %s157_s17  ;;  %v106_v48 = vstv %s156_s21  ;;  %v111_v51 = vstv %s109_s22  ;;  %v115_v54 = vstv %s159_s23 }
  0x1e   :  { %v81_v31 = vmax.f32 %v74_v27, %v76_v28  ;;  %v82_v32 = vmax.f32 %v78_v29, %v80_v30  ;;  %v120_v58 = vstv %s160_s24  ;;  %v125_v62 = vstv %s161_s25 }
  0x1f   :  { %v130_v2 = vstv %s128_s26 }
  0x20   :  { %v83_v33 = vmax.f32 %v81_v31, %v82_v32 }
  0x22   :  { %84 = vmax.xlane.f32.xlu0 %v83_v33 }
  0xab   :  { %v85_v34 = vpop.xlane.xlu0 %84 }
  0xac   :  { %v86_v35 = vrot.slane %v85_v34, 4 }
  0xae   :  { %v87_v36 = vmax.f32 %v85_v34, %v86_v35 }
  0xb0   :  { %v88_v37 = vrot.slane %v87_v36, 2 }
  0xb2   :  { %v89_v38 = vmax.f32 %v87_v36, %v88_v37 }
  0xb4   :  { %v90_v39 = vrot.slane %v89_v38, 1 }
  0xb6   :  { %v91_v40 = vmax.f32 %v89_v38, %v90_v39 }
  0xb8   :  { %162 = vpush %v91_v40 }
  0xe9   :  { %s163_s0 = spop %162 }
  0xea   :  { %s93_s1 = sadd.f32 1e-08, %s163_s0 }
  0xec   :  { %v94_v41 = vstv %s93_s1 }
  0xed   :  { %169 = vrcp.f32 %v94_v41 }
  0xfa   :  { %v170_v42 = vpop.eup %169 }
  0xfb   :  { %164 = vpush %v170_v42 }
 0x12c   :  { %s165_s18 = spop %164 }
 0x12d   :  { %s97_s20 = smul.f32 2.0, %s165_s18 }
 0x12f   :  { %v98_v43 = vstv %s97_s20 }
 0x130   :  { %v99_v44 = vmul.f32 %v98_v43, %v26_v10 }
 0x132   :  { %v155_v45 = vadd.f32 -1.0, %v99_v44 }
 0x134   :  { %v101_v47 = vadd.f32 %v155_v45, %v155_v45 }
 0x136   :  { %v105_v49 = vmul.f32 %v104_v46, %v101_v47 }
 0x138   :  { %v107_v50 = vadd.f32 %v106_v48, %v105_v49 }
 0x13a   :  { %v110_v52 = vmul.f32 %v107_v50, %v101_v47 }
 0x13c   :  { %v112_v53 = vadd.f32 %v111_v51, %v110_v52 }
 0x13e   :  { %v114_v55 = vmul.f32 %v112_v53, %v101_v47 }
 0x140   :  { %v116_v56 = vadd.f32 %v115_v54, %v114_v55 }
 0x142   :  { %v117_v57 = vsub.f32 %v116_v56, %v107_v50 }
 0x144   :  { %v119_v59 = vmul.f32 %v117_v57, %v101_v47 }
 0x146   :  { %v121_v60 = vadd.f32 %v120_v58, %v119_v59 }
 0x148   :  { %v122_v61 = vsub.f32 %v121_v60, %v112_v53 }
 0x14a   :  { %v124_v63 = vmul.f32 %v122_v61, %v101_v47 }
 0x14c   :  { %v126_v0 = vadd.f32 %v125_v62, %v124_v63 }
 0x14e   :  { %v127_v1 = vsub.f32 %v126_v0, %v117_v57 }
 0x150   :  { %v129_v3 = vmul.f32 %v155_v45, %v127_v1 }
 0x152   :  { %v131_v4 = vadd.f32 %v130_v2, %v129_v3 }
 0x154   :  { %v132_v5 = vsub.f32 %v131_v4, %v122_v61 }
 0x156   :  { %v133_v6 = vand.u32 2147483647, %v132_v5 }
 0x158   :  { %v134_v7 = vmin.f32 %v133_v6, 10.0 }
 0x15a   :  { %v135_v8 = vsub.f32 0.0, %v134_v7 }
 0x15c   :  { %v136_v9 = vmul.f32 1.442695, %v135_v8 }
 0x15e   :  { %171 = vpow2.f32 %v136_v9 }
 0x16b   :  { %v172_v10 = vpop.eup %171 }
 0x16c   :  { %v138_v11 = vadd.f32 1e-06, %v172_v10 }
 0x16e   :  { %139 = vst [vmem:[#allocation7] sm:$0xff] %v138_v11 }
 0x16f   :  { %212 = shalt.err (!%p209_p9)
}
 0x170   :  { %149 = dma.vmem_to_hbm [thread:$0]  %s147_s28, 128, %s264_s2, [#allocation6]  }
 0x171   :  { %225 = dma.done.wait [#allocation6], 128  }
 0x172   :  { %226 = vsyncadd [#allocation6], 4294967168 }
 0x173   :  { %153 = vsyncpa [#allocation5], 1 }
 0x174   :  { %154 = vsyncpa [#allocation6], 1 }

</bundles_post_ra>
